<compile_context>
chip_gen: v6e
topology: v6e:2x2x1
jax: 0.10.0
libtpu: 0.0.40
codegen_flags: <defaults>
</compile_context>

<pallas_src>
import functools
import math

import jax
import jax.numpy as jnp
from jax.experimental import pallas as pl
from jax.experimental.pallas import tpu as pltpu


def _round_up(n, m):
    return ((n + m - 1) // m) * m


def _is_v5e():
    try:
        kind = jax.devices()[0].device_kind.lower()
        return ("v5 lite" in kind) or ("v5e" in kind) or ("v5litepod" in kind)
    except Exception:
        return False


def _vmem_limit_bytes():
    # ~3/4 of physical VMEM: ~96 MiB on v5e/v6e (128 MiB), ~48 MiB on v7x (64 MiB).
    try:
        cap = pltpu.get_tpu_info().vmem_capacity_bytes
    except Exception:
        cap = 64 * 1024 * 1024        # conservative (v7x-sized) fallback
    return int(max(32 << 20, min(100 << 20, (cap * 3) // 4)))


def gradnorm_kernel(x_ref, w1t_ref, b1_ref, w2_ref, g_ref, b2_ref,
                    out_ref, h_acc):
    """Grid = (batch tiles ["parallel"], D chunks ["arbitrary"]).

    x_ref   : (TB, TK)      f32/bf16  batch x D-chunk tile (pipelined from HBM)
    w1t_ref : (TK, Hd)      f32/bf16  transposed first-layer weight chunk
    b1_ref  : (1, Hd)       f32       resident
    w2_ref  : (1, Hd)       f32       resident
    g_ref   : (Hd, Hd)      f32/bf16  Gram matrix W1 @ W1.T, resident
    b2_ref  : (1, 1)        f32       SMEM scalar
    out_ref : (TB, 128)     f32/bf16  lane-broadcast result (column 0 valid)
    h_acc   : (TB, Hd)      f32       VMEM scratch: pre-activation accumulator
    """
    k = pl.program_id(1)

    @pl.when(k == 0)
    def _():
        h_acc[...] = jnp.zeros_like(h_acc)

    # h += x_chunk @ w1t_chunk — natural contraction, f32 accumulation on MXU.
    h_acc[...] += jnp.dot(x_ref[...], w1t_ref[...],
                          preferred_element_type=jnp.float32)

    @pl.when(k == pl.num_programs(1) - 1)
    def _():
        b1 = b1_ref[...]                              # (1, Hd)
        w2 = w2_ref[...]                              # (1, Hd)
        b2 = b2_ref[0, 0]                             # scalar (SMEM)

        h = h_acc[...] + b1                           # (TB, Hd)
        scale = jnp.where(h > 0.0, 1.0, 0.2)          # LeakyReLU'(h), reused
        a = scale * h                                 # LeakyReLU_0.2(h)

        # fx = a @ w2.T + b2 : N=1 matmul done as VPU mul + lane reduction.
        fx = jnp.sum(a * w2, axis=1, keepdims=True) + b2          # (TB, 1)

        # d(sum fx)/dh = LeakyReLU'(h) * w2 ; ||grad_x||^2 = g_h (W1 W1^T) g_h^T
        g_h = scale * w2                                          # (TB, Hd)
        t = jnp.dot(g_h.astype(g_ref.dtype), g_ref[...],
                    preferred_element_type=jnp.float32)           # (TB, Hd)
        ss = jnp.sum(t * g_h, axis=1, keepdims=True)              # (TB, 1)

        res = fx / (jnp.sqrt(ss) + jnp.abs(fx))                   # (TB, 1)

        # Lane-dense, unmasked store across the 128-lane pad (bf16 on the
        # bf16 path halves output HBM bytes).
        out_ref[...] = jnp.broadcast_to(res, out_ref.shape).astype(out_ref.dtype)


@functools.partial(jax.jit, static_argnames=("use_bf16", "tb", "tk"))
def gradnorm_forward(x_nchw, w1, b1, w2, b2, *, use_bf16=None,
                     tb=2048, tk=512):
    """x_nchw: (B, C, H, W) f32 -> (B,) f32, matching GradNorm.forward."""
    if use_bf16 is None:
        use_bf16 = _is_v5e()          # bf16 is v5e's only fast MXU path

    B = x_nchw.shape[0]
    D = math.prod(x_nchw.shape[1:])
    Hd = w1.shape[0]
    x2d = x_nchw.reshape(B, D)        # same row-major flatten as torch .reshape

    # ---- tiling -------------------------------------------------------------
    Hd_pad = _round_up(Hd, 128)
    TK = max(128, min(_round_up(tk, 128), _round_up(D, 128)))
    D_pad = _round_up(D, TK)
    num_k = D_pad // TK

    # Batch tiles: multiple of 16 (bf16 sublane packing); >= 2 tiles (even
    # count) whenever B allows it, so both v7x TensorCores get work.
    B_pad0 = _round_up(B, 16)
    tb_cap = max(16, _round_up(tb, 16))
    num_b = max(1, -(-B_pad0 // tb_cap))
    if num_b == 1 and B_pad0 >= 32:
        num_b = 2
    if num_b > 1 and num_b % 2 == 1:
        num_b += 1
    TB = _round_up(-(-B_pad0 // num_b), 16)
    B_pad = TB * num_b

    # ---- wrapper-side prep (bf16 cast here, not in-kernel) ------------------
    in_dtype = jnp.bfloat16 if use_bf16 else jnp.float32
    out_dtype = jnp.bfloat16 if use_bf16 else jnp.float32

    w1f = w1.astype(jnp.float32)
    # Pre-transposed weights (D, Hd): lane-dense, no in-kernel transpose.
    w1t = jnp.pad(w1f.T, ((0, D_pad - D), (0, Hd_pad - Hd))).astype(in_dtype)
    # Gram matrix for the backward pass (full-precision precompute).
    gram = jnp.matmul(w1f, w1f.T, precision=jax.lax.Precision.HIGHEST)
    gram = jnp.pad(gram, ((0, Hd_pad - Hd), (0, Hd_pad - Hd))).astype(in_dtype)
    b1p = jnp.pad(b1.astype(jnp.float32), ((0, 0), (0, Hd_pad - Hd)))
    w2p = jnp.pad(w2.astype(jnp.float32), ((0, 0), (0, Hd_pad - Hd)))
    b2p = b2.astype(jnp.float32).reshape(1, 1)
    x2d = jnp.pad(x2d.astype(jnp.float32),
                  ((0, B_pad - B), (0, D_pad - D))).astype(in_dtype)

    out = pl.pallas_call(
        gradnorm_kernel,
        out_shape=jax.ShapeDtypeStruct((B_pad, 128), out_dtype),
        grid=(num_b, num_k),
        in_specs=[
            # x: tiled over (batch, D). On v7x, pipeline_mode=pl.Buffered(3)
            # here if xprof shows exposed x DMA at step boundaries.
            pl.BlockSpec((TB, TK), lambda i, k: (i, k)),
            pl.BlockSpec((TK, Hd_pad), lambda i, k: (k, 0)),       # w1t chunk
            pl.BlockSpec((1, Hd_pad), lambda i, k: (0, 0)),        # b1 resident
            pl.BlockSpec((1, Hd_pad), lambda i, k: (0, 0)),        # w2 resident
            pl.BlockSpec((Hd_pad, Hd_pad), lambda i, k: (0, 0)),   # Gram resident
            pl.BlockSpec(memory_space=pltpu.MemorySpace.SMEM),     # b2 scalar
        ],
        out_specs=pl.BlockSpec((TB, 128), lambda i, k: (i, 0)),
        scratch_shapes=[pltpu.VMEM((TB, Hd_pad), jnp.float32)],
        compiler_params=pltpu.CompilerParams(
            dimension_semantics=("parallel", "arbitrary"),
            vmem_limit_bytes=_vmem_limit_bytes()),
    )(x2d, w1t, b1p, w2p, gram, b2p)

    return out[:B, 0].astype(jnp.float32)


# ---- pure-JAX reference (real autodiff, mirrors the torch code) -------------
def _main_ref(x2d, w1, b1, w2, b2):
    h = x2d @ w1.T + b1
    a = jnp.where(h > 0, h, 0.2 * h)
    return a @ w2.T + b2                                          # (B, 1)


def gradnorm_ref(x_nchw, w1, b1, w2, b2):
    B = x_nchw.shape[0]
    x2d = x_nchw.reshape(B, -1)
    fx, vjp = jax.vjp(lambda xx: _main_ref(xx, w1, b1, w2, b2), x2d)
    (grad_x,) = vjp(jnp.ones_like(fx))
    grad_norm = jnp.linalg.norm(grad_x.reshape(B, -1), axis=1).reshape(-1, 1)
    out = fx / (grad_norm + jnp.abs(fx))
    return out[:, 0]


if __name__ == "__main__":
    B, C, H, W = 2, 4, 16, 16
    D = C * H * W                         # 1024
    Hd = 128                              # hidden width of the synthetic `main`

    key = jax.random.PRNGKey(0)
    kx, k1, k2, k3, k4 = jax.random.split(key, 5)
    x = jax.random.normal(kx, (B, C, H, W), dtype=jnp.float32)
    w1 = jax.random.normal(k1, (Hd, D), dtype=jnp.float32) * 0.02
    b1 = jax.random.normal(k2, (1, Hd), dtype=jnp.float32) * 0.01
    w2 = jax.random.normal(k3, (1, Hd), dtype=jnp.float32) * 0.02
    b2 = jax.random.normal(k4, (1, 1), dtype=jnp.float32) * 0.01
    # TODO(synk): spectral_norm wrappers from RelGAN_D are a training-time
    # weight reparameterization; weights here are plain deterministic inits.

    ref = gradnorm_ref(x, w1, b1, w2, b2)

    # f32 path — exact semantics (Gram trick is algebraically identical).
    out = jax.block_until_ready(
        gradnorm_forward(x, w1, b1, w2, b2, use_bf16=False))
    assert out.shape == (B,), out.shape
    assert jnp.allclose(out, ref, atol=1e-4, rtol=1e-4), (out, ref)

    # bf16 path (v5e default / v6e-v7x fast path): bf16 x, w1t, Gram and
    # output store; f32 accumulation. Output is bounded (|out| <= 1).
    out_bf16 = jax.block_until_ready(
        gradnorm_forward(x, w1, b1, w2, b2, use_bf16=True))
    assert jnp.allclose(out_bf16, ref, atol=5e-2, rtol=5e-2), (out_bf16, ref)

    print("KERNEL_OK")
</pallas_src>

<mosaic_0001>
module attributes {stable_mosaic.version = 11 : i64} {
  func.func @gradnorm_kernel(%arg0: i32, %arg1: i32, %arg2: memref<16x512xf32, #tpu.memory_space<vmem>>, %arg3: memref<512x128xf32, #tpu.memory_space<vmem>>, %arg4: memref<1x128xf32, #tpu.memory_space<vmem>>, %arg5: memref<1x128xf32, #tpu.memory_space<vmem>>, %arg6: memref<128x128xf32, #tpu.memory_space<vmem>>, %arg7: memref<1x1xf32, #tpu.memory_space<smem>>, %arg8: memref<16x128xf32, #tpu.memory_space<vmem>>, %arg9: memref<16x128xf32, #tpu.memory_space<vmem>>) attributes {dimension_semantics = [#tpu.dimension_semantics<parallel>, #tpu.dimension_semantics<arbitrary>], iteration_bounds = array<i64: 1, 2>, scalar_prefetch = 0 : i64, scratch_operands = 1 : i64, tpu.core_type = #tpu.core_type<tc>, window_params = [{transform_indices = @transform_0, window_bounds = array<i64: 16, 512>}, {transform_indices = @transform_1, window_bounds = array<i64: 512, 128>}, {pipeline_mode = #tpu.pipeline_mode<synchronous>, transform_indices = @transform_2, window_bounds = array<i64: 1, 128>}, {pipeline_mode = #tpu.pipeline_mode<synchronous>, transform_indices = @transform_3, window_bounds = array<i64: 1, 128>}, {pipeline_mode = #tpu.pipeline_mode<synchronous>, transform_indices = @transform_4, window_bounds = array<i64: 128, 128>}, {transform_indices = @transform_5, window_bounds = array<i64: 1, 1>}, {transform_indices = @transform_6, window_bounds = array<i64: 16, 128>}]} {
    %c0_i32 = arith.constant 0 : i32
    %0 = arith.cmpi eq, %arg1, %c0_i32 : i32
    %1 = arith.extui %0 : i1 to i32
    %c0_i32_0 = arith.constant 0 : i32
    %2 = arith.cmpi ne, %1, %c0_i32_0 : i32
    scf.if %2 {
      %cst_9 = arith.constant 0.000000e+00 : f32
      %12 = vector.broadcast %cst_9 : f32 to vector<16x128xf32>
      %c0_10 = arith.constant 0 : index
      %c0_11 = arith.constant 0 : index
      %13 = vector.load %arg9[%c0_10, %c0_11] : memref<16x128xf32, #tpu.memory_space<vmem>>, vector<16x128xf32>
      tpu.vector_store %arg9[%c0_10, %c0_11], %12 {strides = array<i32>} : memref<16x128xf32, #tpu.memory_space<vmem>>, vector<16x128xf32>,
    } else {
    }
    %c0 = arith.constant 0 : index
    %c0_1 = arith.constant 0 : index
    %3 = vector.load %arg9[%c0, %c0_1] : memref<16x128xf32, #tpu.memory_space<vmem>>, vector<16x128xf32>
    %c0_2 = arith.constant 0 : index
    %c0_3 = arith.constant 0 : index
    %4 = vector.load %arg2[%c0_2, %c0_3] : memref<16x512xf32, #tpu.memory_space<vmem>>, vector<16x512xf32>
    %c0_4 = arith.constant 0 : index
    %c0_5 = arith.constant 0 : index
    %5 = vector.load %arg3[%c0_4, %c0_5] : memref<512x128xf32, #tpu.memory_space<vmem>>, vector<512x128xf32>
    %cst = arith.constant dense<0.000000e+00> : vector<16x128xf32>
    %6 = tpu.matmul %4, %5, %cst {dimension_numbers = #tpu.dot_dimension_numbers<[1], [0], [0], [1], [0, 0, 1, 1], [], []>} : vector<16x512xf32>, vector<512x128xf32>, vector<16x128xf32> -> vector<16x128xf32>
    %7 = arith.addf %3, %6 : vector<16x128xf32>
    %c0_6 = arith.constant 0 : index
    %c0_7 = arith.constant 0 : index
    %8 = vector.load %arg9[%c0_6, %c0_7] : memref<16x128xf32, #tpu.memory_space<vmem>>, vector<16x128xf32>
    tpu.vector_store %arg9[%c0_6, %c0_7], %7 {strides = array<i32>} : memref<16x128xf32, #tpu.memory_space<vmem>>, vector<16x128xf32>,
    %c1_i32 = arith.constant 1 : i32
    %9 = arith.cmpi eq, %arg1, %c1_i32 : i32
    %10 = arith.extui %9 : i1 to i32
    %c0_i32_8 = arith.constant 0 : i32
    %11 = arith.cmpi ne, %10, %c0_i32_8 : i32
    scf.if %11 {
      %c0_9 = arith.constant 0 : index
      %c0_10 = arith.constant 0 : index
      %12 = vector.load %arg4[%c0_9, %c0_10] : memref<1x128xf32, #tpu.memory_space<vmem>>, vector<1x128xf32>
      %c0_11 = arith.constant 0 : index
      %c0_12 = arith.constant 0 : index
      %13 = vector.load %arg5[%c0_11, %c0_12] : memref<1x128xf32, #tpu.memory_space<vmem>>, vector<1x128xf32>
      %c0_13 = arith.constant 0 : index
      %c0_14 = arith.constant 0 : index
      %14 = memref.load %arg7[%c0_13, %c0_14] : memref<1x1xf32, #tpu.memory_space<smem>>
      %c0_15 = arith.constant 0 : index
      %c0_16 = arith.constant 0 : index
      %15 = vector.load %arg9[%c0_15, %c0_16] : memref<16x128xf32, #tpu.memory_space<vmem>>, vector<16x128xf32>
      %16 = vector.broadcast %12 : vector<1x128xf32> to vector<16x128xf32>
      %17 = arith.addf %15, %16 : vector<16x128xf32>
      %cst_17 = arith.constant 0.000000e+00 : f32
      %18 = vector.broadcast %cst_17 : f32 to vector<16x128xf32>
      %19 = arith.cmpf ogt, %17, %18 : vector<16x128xf32>
      %cst_18 = arith.constant 1.000000e+00 : f32
      %cst_19 = arith.constant 2.000000e-01 : f32
      %20 = vector.broadcast %cst_18 : f32 to vector<16x128xf32>
      %21 = vector.broadcast %cst_19 : f32 to vector<16x128xf32>
      %22 = arith.select %19, %20, %21 : vector<16x128xi1>, vector<16x128xf32>
      %23 = arith.mulf %22, %17 : vector<16x128xf32>
      %24 = vector.broadcast %13 : vector<1x128xf32> to vector<16x128xf32>
      %25 = arith.mulf %23, %24 : vector<16x128xf32>
      %cst_20 = arith.constant dense<0.000000e+00> : vector<16xf32>
      %26 = vector.multi_reduction <add>, %25, %cst_20 [1] : vector<16x128xf32> to vector<16xf32>
      %27 = vector.shape_cast %26 : vector<16xf32> to vector<16x1xf32>
      %28 = vector.broadcast %14 : f32 to vector<16x1xf32>
      %29 = arith.addf %27, %28 : vector<16x1xf32>
      %30 = vector.broadcast %13 : vector<1x128xf32> to vector<16x128xf32>
      %31 = arith.mulf %22, %30 : vector<16x128xf32>
      %c0_21 = arith.constant 0 : index
      %c0_22 = arith.constant 0 : index
      %32 = vector.load %arg6[%c0_21, %c0_22] : memref<128x128xf32, #tpu.memory_space<vmem>>, vector<128x128xf32>
      %cst_23 = arith.constant dense<0.000000e+00> : vector<16x128xf32>
      %33 = tpu.matmul %31, %32, %cst_23 {dimension_numbers = #tpu.dot_dimension_numbers<[1], [0], [0], [1], [0, 0, 1, 1], [], []>} : vector<16x128xf32>, vector<128x128xf32>, vector<16x128xf32> -> vector<16x128xf32>
      %34 = arith.mulf %33, %31 : vector<16x128xf32>
      %cst_24 = arith.constant dense<0.000000e+00> : vector<16xf32>
      %35 = vector.multi_reduction <add>, %34, %cst_24 [1] : vector<16x128xf32> to vector<16xf32>
      %36 = vector.shape_cast %35 : vector<16xf32> to vector<16x1xf32>
      %37 = math.sqrt %36 : vector<16x1xf32>
      %38 = math.absf %29 : vector<16x1xf32>
      %39 = arith.addf %37, %38 : vector<16x1xf32>
      %40 = arith.divf %29, %39 : vector<16x1xf32>
      %41 = vector.shape_cast %40 : vector<16x1xf32> to vector<16x1xf32>
      %42 = vector.broadcast %41 : vector<16x1xf32> to vector<16x128xf32>
      %c0_25 = arith.constant 0 : index
      %c0_26 = arith.constant 0 : index
      %43 = vector.load %arg8[%c0_25, %c0_26] : memref<16x128xf32, #tpu.memory_space<vmem>>, vector<16x128xf32>
      tpu.vector_store %arg8[%c0_25, %c0_26], %42 {strides = array<i32>} : memref<16x128xf32, #tpu.memory_space<vmem>>, vector<16x128xf32>,
    } else {
    }
    return
  }
  func.func @transform_0(%arg0: i32, %arg1: i32) -> (i32, i32) {
    %c0_i32 = arith.constant 0 : i32
    return %arg0, %arg1 : i32, i32
  }
  func.func @transform_1(%arg0: i32, %arg1: i32) -> (i32, i32) {
    %c0_i32 = arith.constant 0 : i32
    %c0_i32_0 = arith.constant 0 : i32
    return %arg1, %c0_i32 : i32, i32
  }
  func.func @transform_2(%arg0: i32, %arg1: i32) -> (i32, i32) {
    %c0_i32 = arith.constant 0 : i32
    %c0_i32_0 = arith.constant 0 : i32
    %c0_i32_1 = arith.constant 0 : i32
    return %c0_i32, %c0_i32_0 : i32, i32
  }
  func.func @transform_3(%arg0: i32, %arg1: i32) -> (i32, i32) {
    %c0_i32 = arith.constant 0 : i32
    %c0_i32_0 = arith.constant 0 : i32
    %c0_i32_1 = arith.constant 0 : i32
    return %c0_i32, %c0_i32_0 : i32, i32
  }
  func.func @transform_4(%arg0: i32, %arg1: i32) -> (i32, i32) {
    %c0_i32 = arith.constant 0 : i32
    %c0_i32_0 = arith.constant 0 : i32
    %c0_i32_1 = arith.constant 0 : i32
    return %c0_i32, %c0_i32_0 : i32, i32
  }
  func.func @transform_5(%arg0: i32, %arg1: i32) -> (i32, i32) {
    %c0_i32 = arith.constant 0 : i32
    %c0_i32_0 = arith.constant 0 : i32
    %c0_i32_1 = arith.constant 0 : i32
    return %c0_i32, %c0_i32_0 : i32, i32
  }
  func.func @transform_6(%arg0: i32, %arg1: i32) -> (i32, i32) {
    %c0_i32 = arith.constant 0 : i32
    %c0_i32_0 = arith.constant 0 : i32
    return %arg0, %c0_i32 : i32, i32
  }
}

</mosaic_0001>

<bundles_post_ra>
// kernel: gradnorm_forward.1
= control target key start
LH: loop header
LB: loop body
LE: loop exit
PB: predicated region body
PF: predicated region fallthrough
CT: control target
= control target key end

     0   :  { %s1288_s0 = inlined_call_operand.vmem [shape: f32[16,1024], index: 0, kind: input, shape index: {}]   ;;  %s1289_s1 = inlined_call_operand.vmem [shape: f32[1024,128], index: 1, kind: input, shape index: {}]   ;;  %s1290_s2 = inlined_call_operand.vmem [shape: f32[1,128], index: 2, kind: input, shape index: {}]   ;;  %s1291_s3 = inlined_call_operand.vmem [shape: f32[1,128], index: 3, kind: input, shape index: {}]   ;;  %s1292_s4 = inlined_call_operand.vmem [shape: f32[128,128], index: 4, kind: input, shape index: {}]   ;;  %s1293_s5 = inlined_call_operand.<no memory space> [shape: f32[1,1], index: 5, kind: input, shape index: {}]   ;;  %s1294_s6 = inlined_call_operand.vmem [shape: f32[16,128], index: 6, kind: output, shape index: {}]  }
   0x1   :  { %11 = sst [smem:[#allocation3]] %s1293_s5 }
   0x2   :  { %s1085_s23 = smov 0   ;;  %s1087_s24 = smov 0  }
   0x3   :  { %s1089_s25 = smov 0   ;;  %s1091_s26 = smov 0  }
   0x4   :  { %s1093_s27 = smov 0  }
   0x5 LB: > { %s26_s5 = sadd.s32 1, %s1039_s26  ;;  %p45_p1 = scmp.ne.s32.totalorder %s1031_s24, %s1027_s23  ;;  %s1043_s27 = sphi %s1093_s27, %s17_s27   ;;  %s1039_s26 = sphi %s1091_s26, %s1298_s26   ;;  %s1035_s25 = sphi %s1089_s25, %s1297_s25   ;;  %s1031_s24 = sphi %s1087_s24, %s1296_s24   ;;  %s1027_s23 = sphi %s1085_s23, %s1295_s23  }
   0x6   : > { %p27_p0 = scmp.ge.s32.totalorder %s26_s5, 2  ;;  %p46_p2 = scmp.eq.s32.totalorder %s1043_s27, 0 }
   0x7   : > { %s38_s29 = sadd.s32 1, %s1031_s24  ;;  %p809_p5 = scmp.ge.s32.totalorder %s1043_s27, 2 }
   0x8   : > { %s1300_s5 = smov (%p27_p0, %s26_s5), 0  ;;  %p47_p3 = por %p46_p2, %p45_p1 }
   0x9   : > { %s34_s28 = ssub.s32 %s1039_s26, %s1300_s5  ;;  %219 = sbr.rel (%p809_p5) target bundleno = 22 (0x16), region = 32 }
   0xa   : > { %p36_p4 = scmp.eq.s32.totalorder %s34_s28, 0 }
   0xc   : > { %s1120_s30 = scalar_select %p36_p4, %s1031_s24, %s38_s29  }
   0xe   : > { %222 = sbr.rel (!%p47_p3) target bundleno = 22 (0x16), region = 36  ;;  %s224_s7 = sand.u32 (%p47_p3), 1, %s1031_s24  }
   0xf   : > { %s825_s8 = sshll.u32 (%p47_p3), %s1039_s26, 5  ;;  %s810_s9 = sshll.u32 (%p47_p3), %s224_s7, 6 }
  0x10   : > { %s232_s12 = scalar_lea.vmem (%p47_p3), %s1288_s0, %s825_s8  ;;  %s226_s13 = scalar_lea.vmem (%p47_p3), [#allocation4], %s810_s9 }
  0x11   : > { %v245_v0 = vld [vmem:[%s232_s12] sm:$0xff] (%p47_p3)  ;;  %v247_v1 = vld [vmem:[%s232_s12 + $0x8] sm:$0xff] (%p47_p3)  ;;  %v249_v2 = vld [vmem:[%s232_s12 + $0x10] sm:$0xff] (%p47_p3) }
  0x12   : > { %246 = vst [vmem:[%s226_s13] sm:$0xff] (%p47_p3), %v245_v0  ;;  %248 = vst [vmem:[%s226_s13 + $0x8] sm:$0xff] (%p47_p3), %v247_v1  ;;  %v251_v3 = vld [vmem:[%s232_s12 + $0x18] sm:$0xff] (%p47_p3)  ;;  %v253_v4 = vld [vmem:[%s232_s12 + $0x40] sm:$0xff] (%p47_p3) }
  0x13   : > { %250 = vst [vmem:[%s226_s13 + $0x10] sm:$0xff] %v249_v2  ;;  %v255_v5 = vld [vmem:[%s232_s12 + $0x48] sm:$0xff]  ;;  %252 = vst [vmem:[%s226_s13 + $0x18] sm:$0xff] %v251_v3  ;;  %v257_v6 = vld [vmem:[%s232_s12 + $0x50] sm:$0xff] }
  0x14   : > { %254 = vst [vmem:[%s226_s13 + $0x20] sm:$0xff] %v253_v4  ;;  %256 = vst [vmem:[%s226_s13 + $0x28] sm:$0xff] %v255_v5  ;;  %v259_v7 = vld [vmem:[%s232_s12 + $0x58] sm:$0xff] }
  0x15   : > { %258 = vst [vmem:[%s226_s13 + $0x30] sm:$0xff] %v257_v6  ;;  %260 = vst [vmem:[%s226_s13 + $0x38] sm:$0xff] %v259_v7 }
  0x16 PF: > { %p813_p6 = scmp.ge.s32.totalorder %s1043_s27, 1  ;;  %p274_p7 = scmp.lt.s32.totalorder %s1043_s27, 3 }
  0x18   : > { %p275_p8 = pnand %p813_p6, %p274_p7 }
  0x19   : > { %s281_s14 = sand.u32 (!%p275_p8), 1, %s1027_s23   ;;  %s815_s15 = sshll.u32 (!%p275_p8), %s1035_s25, 6 }
  0x1a   : > { %278 = sbr.rel (%p275_p8) target bundleno = 689 (0x2b1), region = 63  ;;  %s814_s16 = sshll.u32 (!%p275_p8), %s281_s14, 6 }
  0x1b   : > { %p318_p9 = scmp.lt.s32.totalorder (!%p275_p8), %s815_s15, 127  ;;  %s1137_s21 = scalar_lea.vmem (!%p275_p8), [#allocation4], %s814_s16 }
  0x1c   : > { %p817_p10 = scmp.ne.s32.totalorder (!%p275_p8), %s1035_s25, 0 }
  0x1f   : > { %s1302_s15 = smov (!%p318_p9, %s815_s15), 127  ;;  %332 = sbr.rel (%p817_p10) target bundleno = 38 (0x26), region = 71 }
  0x20   : > { %s816_s17 = sshll.u32 %s1302_s15, 3 }
  0x21   : > { %s1135_s20 = scalar_lea.vmem %s1289_s1, %s816_s17 }
  0x24   : > { %v1045_v8 = vmov 0.0  }
  0x25   : > { %333 = vst [vmem:[#allocation2] sm:$0xff] %v1045_v8  ;;  %334 = vst [vmem:[#allocation2 + $0x8] sm:$0xff] %v1045_v8 }
  0x26 PF: > { %v376_v9 = vld [vmem:[%s1135_s20 + $0xf8] sm:$0xff]  ;;  %v375_v13 = vld [vmem:[%s1135_s20 + $0xf0] sm:$0xff]  ;;  %v374_v17 = vld [vmem:[%s1135_s20 + $0xe8] sm:$0xff]  ;;  %p818_p11 = scmp.ne.s32.totalorder %s1035_s25, 1 }
  0x27   : > { %v408_v10 = vld [vmem:[%s1135_s20 + $0x1f8] sm:$0xff]  ;;  %826 = vmatprep.subr.mxu0 %v376_v9  ;;  %v407_v14 = vld [vmem:[%s1135_s20 + $0x1f0] sm:$0xff]  ;;  %v406_v18 = vld [vmem:[%s1135_s20 + $0x1e8] sm:$0xff]  ;;  %s569_s18 = sld [smem:[#allocation3]] (!%p818_p11) }
  0x28   : > { %v360_v11 = vld [vmem:[%s1135_s20 + $0x78] sm:$0xff]  ;;  %864 = vmatprep.subr.mxu1 %v408_v10  ;;  %v359_v15 = vld [vmem:[%s1135_s20 + $0x70] sm:$0xff]  ;;  %v358_v19 = vld [vmem:[%s1135_s20 + $0x68] sm:$0xff] }
  0x29   : > { %v392_v12 = vld [vmem:[%s1135_s20 + $0x178] sm:$0xff]  ;;  %827 = vmatpush3.msra.mxu0 %v360_v11  ;;  %v391_v16 = vld [vmem:[%s1135_s20 + $0x170] sm:$0xff]  ;;  %v390_v20 = vld [vmem:[%s1135_s20 + $0x168] sm:$0xff] }
  0x2a   : > { %865 = vmatpush3.msra.mxu1 %v392_v12  ;;  %828 = vmatprep.subr.mxu0 %v375_v13  ;;  %v373_v21 = vld [vmem:[%s1135_s20 + $0xe0] sm:$0xff]  ;;  %v372_v25 = vld [vmem:[%s1135_s20 + $0xd8] sm:$0xff]  ;;  %v371_v29 = vld [vmem:[%s1135_s20 + $0xd0] sm:$0xff] }
  0x2b   : > { %866 = vmatprep.subr.mxu1 %v407_v14  ;;  %829 = vmatpush3.msra.mxu0 %v359_v15  ;;  %v405_v22 = vld [vmem:[%s1135_s20 + $0x1e0] sm:$0xff]  ;;  %v404_v26 = vld [vmem:[%s1135_s20 + $0x1d8] sm:$0xff]  ;;  %v403_v30 = vld [vmem:[%s1135_s20 + $0x1d0] sm:$0xff] }
  0x2c   : > { %867 = vmatpush3.msra.mxu1 %v391_v16  ;;  %830 = vmatprep.subr.mxu0 %v374_v17  ;;  %v357_v23 = vld [vmem:[%s1135_s20 + $0x60] sm:$0xff]  ;;  %v356_v27 = vld [vmem:[%s1135_s20 + $0x58] sm:$0xff]  ;;  %v355_v31 = vld [vmem:[%s1135_s20 + $0x50] sm:$0xff] }
  0x2d   : > { %868 = vmatprep.subr.mxu1 %v406_v18  ;;  %v389_v24 = vld [vmem:[%s1135_s20 + $0x160] sm:$0xff]  ;;  %831 = vmatpush3.msra.mxu0 %v358_v19  ;;  %v388_v28 = vld [vmem:[%s1135_s20 + $0x158] sm:$0xff]  ;;  %v387_v32 = vld [vmem:[%s1135_s20 + $0x150] sm:$0xff] }
  0x2e   : > { %869 = vmatpush3.msra.mxu1 %v390_v20  ;;  %832 = vmatprep.subr.mxu0 %v373_v21  ;;  %v370_v33 = vld [vmem:[%s1135_s20 + $0xc8] sm:$0xff]  ;;  %v369_v37 = vld [vmem:[%s1135_s20 + $0xc0] sm:$0xff]  ;;  %v368_v41 = vld [vmem:[%s1135_s20 + $0xb8] sm:$0xff] }
  0x2f   : > { %870 = vmatprep.subr.mxu1 %v405_v22  ;;  %833 = vmatpush3.msra.mxu0 %v357_v23  ;;  %v402_v34 = vld [vmem:[%s1135_s20 + $0x1c8] sm:$0xff]  ;;  %v401_v38 = vld [vmem:[%s1135_s20 + $0x1c0] sm:$0xff]  ;;  %v400_v42 = vld [vmem:[%s1135_s20 + $0x1b8] sm:$0xff] }
  0x30   : > { %871 = vmatpush3.msra.mxu1 %v389_v24  ;;  %834 = vmatprep.subr.mxu0 %v372_v25  ;;  %v354_v35 = vld [vmem:[%s1135_s20 + $0x48] sm:$0xff]  ;;  %v353_v39 = vld [vmem:[%s1135_s20 + $0x40] sm:$0xff]  ;;  %v352_v43 = vld [vmem:[%s1135_s20 + $0x38] sm:$0xff] }
  0x31   : > { %872 = vmatprep.subr.mxu1 %v404_v26  ;;  %835 = vmatpush3.msra.mxu0 %v356_v27  ;;  %v386_v36 = vld [vmem:[%s1135_s20 + $0x148] sm:$0xff]  ;;  %v385_v40 = vld [vmem:[%s1135_s20 + $0x140] sm:$0xff]  ;;  %v384_v44 = vld [vmem:[%s1135_s20 + $0x138] sm:$0xff] }
  0x32   : > { %873 = vmatpush3.msra.mxu1 %v388_v28  ;;  %836 = vmatprep.subr.mxu0 %v371_v29  ;;  %v367_v45 = vld [vmem:[%s1135_s20 + $0xb0] sm:$0xff]  ;;  %v366_v49 = vld [vmem:[%s1135_s20 + $0xa8] sm:$0xff]  ;;  %v365_v53 = vld [vmem:[%s1135_s20 + $0xa0] sm:$0xff] }
  0x33   : > { %874 = vmatprep.subr.mxu1 %v403_v30  ;;  %837 = vmatpush3.msra.mxu0 %v355_v31  ;;  %v399_v46 = vld [vmem:[%s1135_s20 + $0x1b0] sm:$0xff]  ;;  %v398_v50 = vld [vmem:[%s1135_s20 + $0x1a8] sm:$0xff]  ;;  %v397_v54 = vld [vmem:[%s1135_s20 + $0x1a0] sm:$0xff] }
  0x34   : > { %875 = vmatpush3.msra.mxu1 %v387_v32  ;;  %838 = vmatprep.subr.mxu0 %v370_v33  ;;  %v351_v47 = vld [vmem:[%s1135_s20 + $0x30] sm:$0xff]  ;;  %v350_v51 = vld [vmem:[%s1135_s20 + $0x28] sm:$0xff]  ;;  %v349_v55 = vld [vmem:[%s1135_s20 + $0x20] sm:$0xff] }
  0x35   : > { %876 = vmatprep.subr.mxu1 %v402_v34  ;;  %839 = vmatpush3.msra.mxu0 %v354_v35  ;;  %v383_v48 = vld [vmem:[%s1135_s20 + $0x130] sm:$0xff]  ;;  %v382_v52 = vld [vmem:[%s1135_s20 + $0x128] sm:$0xff]  ;;  %v381_v56 = vld [vmem:[%s1135_s20 + $0x120] sm:$0xff] }
  0x36   : > { %877 = vmatpush3.msra.mxu1 %v386_v36  ;;  %840 = vmatprep.subr.mxu0 %v369_v37  ;;  %v364_v57 = vld [vmem:[%s1135_s20 + $0x98] sm:$0xff]  ;;  %v363_v61 = vld [vmem:[%s1135_s20 + $0x90] sm:$0xff]  ;;  %v362_v1 = vld [vmem:[%s1135_s20 + $0x88] sm:$0xff] }
  0x37   : > { %878 = vmatprep.subr.mxu1 %v401_v38  ;;  %841 = vmatpush3.msra.mxu0 %v353_v39  ;;  %v396_v58 = vld [vmem:[%s1135_s20 + $0x198] sm:$0xff]  ;;  %v395_v62 = vld [vmem:[%s1135_s20 + $0x190] sm:$0xff]  ;;  %v394_v2 = vld [vmem:[%s1135_s20 + $0x188] sm:$0xff] }
  0x38   : > { %879 = vmatpush3.msra.mxu1 %v385_v40  ;;  %842 = vmatprep.subr.mxu0 %v368_v41  ;;  %v348_v59 = vld [vmem:[%s1135_s20 + $0x18] sm:$0xff]  ;;  %v347_v63 = vld [vmem:[%s1135_s20 + $0x10] sm:$0xff]  ;;  %v346_v3 = vld [vmem:[%s1135_s20 + $0x8] sm:$0xff] }
  0x39   : > { %880 = vmatprep.subr.mxu1 %v400_v42  ;;  %843 = vmatpush3.msra.mxu0 %v352_v43  ;;  %v380_v60 = vld [vmem:[%s1135_s20 + $0x118] sm:$0xff]  ;;  %v379_v0 = vld [vmem:[%s1135_s20 + $0x110] sm:$0xff]  ;;  %v378_v4 = vld [vmem:[%s1135_s20 + $0x108] sm:$0xff] }
  0x3a   : > { %881 = vmatpush3.msra.mxu1 %v384_v44  ;;  %844 = vmatprep.subr.mxu0 %v367_v45  ;;  %v361_v5 = vld [vmem:[%s1135_s20 + $0x80] sm:$0xff]  ;;  %v338_v8 = vld [vmem:[%s1137_s21 + $0x8] sm:$0xff]  ;;  %v340_v10 = vld [vmem:[%s1137_s21 + $0x18] sm:$0xff] }
  0x3b   : > { %882 = vmatprep.subr.mxu1 %v399_v46  ;;  %845 = vmatpush3.msra.mxu0 %v351_v47  ;;  %v393_v6 = vld [vmem:[%s1135_s20 + $0x180] sm:$0xff]  ;;  %v337_v11 = vld [vmem:[%s1137_s21] sm:$0xff]  ;;  %v342_v13 = vld [vmem:[%s1137_s21 + $0x28] sm:$0xff] }
  0x3c   : > { %883 = vmatpush3.msra.mxu1 %v383_v48  ;;  %846 = vmatprep.subr.mxu0 %v366_v49  ;;  %v345_v7 = vld [vmem:[%s1135_s20] sm:$0xff]  ;;  %v344_v14 = vld [vmem:[%s1137_s21 + $0x38] sm:$0xff]  ;;  %v341_v15 = vld [vmem:[%s1137_s21 + $0x20] sm:$0xff] }
  0x3d   : > { %884 = vmatprep.subr.mxu1 %v398_v50  ;;  %847 = vmatpush3.msra.mxu0 %v350_v51  ;;  %v377_v9 = vld [vmem:[%s1135_s20 + $0x100] sm:$0xff]  ;;  %v336_v32 = vld [vmem:[#allocation2 + $0x8] sm:$0xff] }
  0x3e   : > { %885 = vmatpush3.msra.mxu1 %v382_v52  ;;  %848 = vmatprep.subr.mxu0 %v365_v53  ;;  %v339_v12 = vld [vmem:[%s1137_s21 + $0x10] sm:$0xff] }
  0x3f   : > { %886 = vmatprep.subr.mxu1 %v397_v54  ;;  %849 = vmatpush3.msra.mxu0 %v349_v55  ;;  %v343_v16 = vld [vmem:[%s1137_s21 + $0x30] sm:$0xff] }
  0x40   : > { %887 = vmatpush3.msra.mxu1 %v381_v56  ;;  %850 = vmatprep.subr.mxu0 %v364_v57  ;;  %v335_v23 = vld [vmem:[#allocation2] sm:$0xff] }
  0x41   : > { %888 = vmatprep.subr.mxu1 %v396_v58  ;;  %851 = vmatpush3.msra.mxu0 %v348_v59 }
  0x42   : > { %889 = vmatpush3.msra.mxu1 %v380_v60  ;;  %852 = vmatprep.subr.mxu0 %v363_v61 }
  0x43   : > { %890 = vmatprep.subr.mxu1 %v395_v62  ;;  %853 = vmatpush3.msra.mxu0 %v347_v63 }
  0x44   : > { %891 = vmatpush3.msra.mxu1 %v379_v0  ;;  %854 = vmatprep.subr.mxu0 %v362_v1 }
  0x45   : > { %892 = vmatprep.subr.mxu1 %v394_v2  ;;  %855 = vmatpush3.msra.mxu0 %v346_v3 }
  0x46   : > { %893 = vmatpush3.msra.mxu1 %v378_v4  ;;  %856 = vmatprep.subr.mxu0 %v361_v5 }
  0x47   : > { %894 = vmatprep.subr.mxu1 %v393_v6  ;;  %857 = vmatpush3.msra.mxu0 %v345_v7 }
  0x48   : > { %473 = vmatprep.mubr.f32.mxu0 %v338_v8  ;;  %895 = vmatpush3.msra.mxu1 %v377_v9 }
  0x49   : > { %548 = vmatprep.mubr.f32.mxu1 %v340_v10  ;;  %474 = vmatmul.mubr.f32.vlgmr.msra.gmra.mxu0 %v337_v11 }
  0x4a   : > { %549 = vmatmul.mubr.f32.vlgmr.msra.gmra.mxu1 %v339_v12  ;;  %478 = vmatprep.mubr.f32.mxu0 %v342_v13 }
  0x4b   : > { %553 = vmatprep.mubr.f32.mxu1 %v344_v14 }
  0x4d   : > { %479 = vmatmul.mubr.f32.gmra.mxu0 %v341_v15 }
  0x4e   : > { %554 = vmatmul.mubr.f32.gmra.mxu1 %v343_v16 }
 0x109   : > { %v858_v17 = vpop.f32.mrf.mxu0 }
 0x10a   : > { %v896_v18 = vpop.f32.mrf.mxu1 }
 0x10b   : > { %v859_v19 = vpop.f32.mrf.mxu0 }
 0x10c   : > { %v897_v20 = vpop.f32.mrf.mxu1  ;;  %v860_v21 = vadd.f32 %v859_v19, %v858_v17 }
 0x10d   : > { %v898_v22 = vadd.f32 %v897_v20, %v896_v18  ;;  %v861_v24 = vpop.f32.mrf.mxu0 }
 0x10e   : > { %v899_v25 = vpop.f32.mrf.mxu1 }
 0x10f   : > { %v551_v26 = vadd.f32 %v898_v22, %v860_v21  ;;  %v862_v27 = vpop.f32.mrf.mxu0 }
 0x110   : > { %v900_v28 = vpop.f32.mrf.mxu1  ;;  %v863_v30 = vadd.f32 %v862_v27, %v861_v24 }
 0x111   : > { %v559_v29 = vadd.f32 %v551_v26, %v335_v23  ;;  %v901_v31 = vadd.f32 %v900_v28, %v899_v25 }
 0x113   : > { %561 = vst [vmem:[#allocation2] sm:$0xff] %v559_v29  ;;  %v556_v33 = vadd.f32 %v901_v31, %v863_v30  ;;  %566 = sbr.rel (%p818_p11) target bundleno = 689 (0x2b1), region = 75 }
 0x115   : > { %v560_v34 = vadd.f32 %v556_v33, %v336_v32 }
 0x117   : > { %562 = vst [vmem:[#allocation2 + $0x8] sm:$0xff] %v560_v34 }
 0x118   : > { %v618_v35 = vld [vmem:[%s1292_s4 + $0x78] sm:$0xff]  ;;  %v617_v36 = vld [vmem:[%s1292_s4 + $0x70] sm:$0xff]  ;;  %v616_v37 = vld [vmem:[%s1292_s4 + $0x68] sm:$0xff]  ;;  %v1046_v46 = vmov 0.2   ;;  %v598_v9 = vstv %s569_s18 }
 0x119   : > { %920 = vmatprep.subr.mxu0 %v618_v35  ;;  %v615_v38 = vld [vmem:[%s1292_s4 + $0x60] sm:$0xff]  ;;  %v614_v40 = vld [vmem:[%s1292_s4 + $0x58] sm:$0xff]  ;;  %v613_v43 = vld [vmem:[%s1292_s4 + $0x50] sm:$0xff] }
 0x11a   : > { %921 = vmatpush3.msra.mxu0 %v618_v35  ;;  %v819_v39 = vld [vmem:[%s1290_s2] ss:$0 sm:$0xff]  ;;  %v612_v45 = vld [vmem:[%s1292_s4 + $0x48] sm:$0xff]  ;;  %v610_v50 = vld [vmem:[%s1292_s4 + $0x38] sm:$0xff] }
 0x11b   : > { %922 = vmatprep.subr.mxu0 %v617_v36  ;;  %v570_v41 = vld [vmem:[#allocation2] sm:$0xff]  ;;  %v609_v51 = vld [vmem:[%s1292_s4 + $0x30] sm:$0xff]  ;;  %v608_v53 = vld [vmem:[%s1292_s4 + $0x28] sm:$0xff] }
 0x11c   : > { %923 = vmatpush3.msra.mxu0 %v617_v36  ;;  %v578_v42 = vadd.f32 %v819_v39, %v570_v41  ;;  %v820_v44 = vld [vmem:[%s1291_s3] ss:$0 sm:$0xff]  ;;  %v606_v56 = vld [vmem:[%s1292_s4 + $0x18] sm:$0xff]  ;;  %v605_v57 = vld [vmem:[%s1292_s4 + $0x10] sm:$0xff] }
 0x11d   : > { %924 = vmatprep.subr.mxu0 %v616_v37  ;;  %v611_v49 = vld [vmem:[%s1292_s4 + $0x40] sm:$0xff]  ;;  %v604_v58 = vld [vmem:[%s1292_s4 + $0x8] sm:$0xff] }
 0x11e   : > { %925 = vmatpush3.msra.mxu0 %v616_v37  ;;  %vm580_vm0 = vcmp.gt.f32.partialorder %v578_v42, 0.0  ;;  %v571_v52 = vld [vmem:[#allocation2 + $0x8] sm:$0xff]  ;;  %v607_v55 = vld [vmem:[%s1292_s4 + $0x20] sm:$0xff] }
 0x11f   : > { %926 = vmatprep.subr.mxu0 %v615_v38  ;;  %v582_v47 = vsel %vm580_vm0, 1.0, %v1046_v46  ;;  %v579_v54 = vadd.f32 %v819_v39, %v571_v52  ;;  %v603_v60 = vld [vmem:[%s1292_s4] sm:$0xff] }
 0x120   : > { %927 = vmatpush3.msra.mxu0 %v615_v38  ;;  %v601_v48 = vmul.f32 %v820_v44, %v582_v47  ;;  %v584_v62 = vmul.f32 %v582_v47, %v578_v42 }
 0x121   : > { %928 = vmatprep.subr.mxu0 %v614_v40  ;;  %vm581_vm1 = vcmp.gt.f32.partialorder %v579_v54, 0.0 }
 0x122   : > { %929 = vmatpush3.msra.mxu0 %v614_v40  ;;  %952 = vmatprep.mubr.f32.mxu0 %v601_v48  ;;  %v583_v59 = vsel %vm581_vm1, 1.0, %v1046_v46  ;;  %v592_v0 = vmul.f32 %v820_v44, %v584_v62 }
 0x123   : > { %930 = vmatprep.subr.mxu0 %v613_v43  ;;  %v602_v61 = vmul.f32 %v820_v44, %v583_v59  ;;  %v585_v63 = vmul.f32 %v583_v59, %v579_v54 }
 0x124   : > { %931 = vmatpush3.msra.mxu0 %v613_v43  ;;  %594 = vadd.xlane.f32.xlu1 %v592_v0 }
 0x125   : > { %932 = vmatprep.subr.mxu0 %v612_v45  ;;  %v593_v1 = vmul.f32 %v820_v44, %v585_v63 }
 0x126   : > { %933 = vmatpush3.msra.mxu0 %v612_v45 }
 0x127   : > { %934 = vmatprep.subr.mxu0 %v611_v49 }
 0x128   : > { %935 = vmatpush3.msra.mxu0 %v611_v49  ;;  %596 = vadd.xlane.f32.xlu1 %v593_v1 }
 0x129   : > { %936 = vmatprep.subr.mxu0 %v610_v50 }
 0x12a   : > { %937 = vmatpush3.msra.mxu0 %v610_v50 }
 0x12b   : > { %938 = vmatprep.subr.mxu0 %v609_v51 }
 0x12c   : > { %939 = vmatpush3.msra.mxu0 %v609_v51 }
 0x12d   : > { %940 = vmatprep.subr.mxu0 %v608_v53 }
 0x12e   : > { %941 = vmatpush3.msra.mxu0 %v608_v53 }
 0x12f   : > { %942 = vmatprep.subr.mxu0 %v607_v55 }
 0x130   : > { %943 = vmatpush3.msra.mxu0 %v607_v55 }
 0x131   : > { %944 = vmatprep.subr.mxu0 %v606_v56 }
 0x132   : > { %945 = vmatpush3.msra.mxu0 %v606_v56 }
 0x133   : > { %946 = vmatprep.subr.mxu0 %v605_v57 }
 0x134   : > { %947 = vmatpush3.msra.mxu0 %v605_v57 }
 0x135   : > { %948 = vmatprep.subr.mxu0 %v604_v58 }
 0x136   : > { %949 = vmatpush3.msra.mxu0 %v604_v58 }
 0x137   : > { %950 = vmatprep.subr.mxu0 %v603_v60 }
 0x138   : > { %951 = vmatpush3.msra.mxu0 %v603_v60 }
 0x139   : > { %953 = vmatmul.mubr.f32.vlgmr.msra.gmra.mxu0 %v602_v61 }
 0x1ad   : > { %v595_v8 = vpop.xlane.xlu1 %594 }
 0x1ae   : > { %v599_v10 = vadd.f32 %v598_v9, %v595_v8 }
 0x1b0   : > { %v714_v14 = vand.u32 2147483647, %v599_v10 }
 0x1b1   : > { %v597_v11 = vpop.xlane.xlu1 %596 }
 0x1b2   : > { %v600_v15 = vadd.f32 %v598_v9, %v597_v11 }
 0x1b4   : > { %v715_v22 = vand.u32 2147483647, %v600_v15 }
 0x1f9   : > { %v954_v2 = vpop.f32.mrf.mxu0 }
 0x1fa   : > { %v695_v5 = vmul.f32 %v954_v2, %v602_v61 }
 0x1fb   : > { %v685_v3 = vpop.f32.mrf.mxu0 }
 0x1fc   : > { %v694_v4 = vmul.f32 %v685_v3, %v601_v48 }
 0x1fe   : > { %696 = vadd.xlane.f32.xlu0 %v694_v4 }
 0x202   : > { %698 = vadd.xlane.f32.xlu0 %v695_v5 }
 0x287   : > { %v697_v6 = vpop.xlane.xlu0 %696 }
 0x288   : > { %997 = vrsqrt.f32 %v697_v6  ;;  %vm702_vm2 = vcmp.eq.f32.partialorder %v697_v6, inf  ;;  %v705_v16 = vand.u32 2147483648, %v697_v6  ;;  %vm704_vm3 = vcmp.eq.f32.partialorder %v697_v6, 0.0 }
 0x28b   : > { %v699_v7 = vpop.xlane.xlu0 %698 }
 0x28c   : > { %999 = vrsqrt.f32 %v699_v7  ;;  %vm709_vm4 = vcmp.eq.f32.partialorder %v699_v7, inf  ;;  %v712_v23 = vand.u32 2147483648, %v699_v7  ;;  %vm711_vm5 = vcmp.eq.f32.partialorder %v699_v7, 0.0 }
 0x295   : > { %v998_v12 = vpop.eup %997 }
 0x296   : > { %v701_v13 = vmul.f32 %v998_v12, %v697_v6 }
 0x298   : > { %v703_v17 = vsel %vm702_vm2, %v697_v6, %v701_v13 }
 0x299   : > { %v1000_v18 = vpop.eup %999  ;;  %v706_v19 = vsel %vm704_vm3, %v705_v16, %v703_v17 }
 0x29a   : > { %v708_v20 = vmul.f32 %v1000_v18, %v699_v7  ;;  %v716_v21 = vadd.f32 %v714_v14, %v706_v19 }
 0x29c   : > { %1001 = vrcp.f32 %v716_v21  ;;  %v710_v24 = vsel %vm709_vm4, %v699_v7, %v708_v20 }
 0x29d   : > { %v713_v25 = vsel %vm711_vm5, %v712_v23, %v710_v24 }
 0x29e   : > { %v717_v26 = vadd.f32 %v715_v22, %v713_v25 }
 0x2a0   : > { %1003 = vrcp.f32 %v717_v26 }
 0x2a9   : > { %v1002_v27 = vpop.eup %1001 }
 0x2aa   : > { %v719_v28 = vmul.f32 %v1002_v27, %v599_v10 }
 0x2ac   : > { %722 = vst [vmem:[%s1294_s6] sm:$0xff] %v719_v28 }
 0x2ad   : > { %v1004_v29 = vpop.eup %1003 }
 0x2ae   : > { %v721_v30 = vmul.f32 %v1004_v29, %v600_v15 }
 0x2b0   : > { %723 = vst [vmem:[%s1294_s6 + $0x8] sm:$0xff] %v721_v30 }
 0x2b1 PF: > { %s17_s27 = sadd.s32 1, %s1043_s27   ;;  %s1295_s23 = smov %s1031_s24 }
 0x2b2   : > { %p14_p12 = scmp.ge.s32.totalorder %s17_s27, 4   ;;  %s1296_s24 = smov %s1120_s30 }
 0x2b3   : > { %s1297_s25 = smov %s1039_s26  ;;  %s1298_s26 = smov %s1300_s5 }
 0x2b4   :  { %16 = sbr.rel (!%p14_p12) target bundleno = 5 (0x5), region = 113 }

</bundles_post_ra>
